<compile_context>
chip_gen: v6e
topology: v6e:2x2x1
jax: 0.10.0
libtpu: 0.0.40
codegen_flags: <defaults>
</compile_context>

<pallas_src>
import jax
import jax.numpy as jnp
from jax.experimental import pallas as pl
from jax.experimental.pallas import tpu as pltpu

# constant.ANSWER_NUM_DICT from the original repo (Ultra-Fine Entity Typing).
ANSWER_NUM_DICT = {'open': 10331, 'wiki': 4600, 'kb': 130}


def _round_up(x, m):
    return ((x + m - 1) // m) * m


def linear_kernel(x_ref, w_ref, o_ref):
    # x_ref: (TM, D) bf16, w_ref: (D, TN) bf16, o_ref: (TM, TN) f32
    o_ref[...] = jnp.dot(x_ref[...], w_ref[...],
                         preferred_element_type=jnp.float32)


def multi_simple_decoder_forward(inputs, weight, output_type,
                                 *, tile_m=256, tile_n=256):
    """inputs: (B, D) float; weight: (ANSWER_NUM_DICT['open'], D) float.

    Returns (B, ANSWER_NUM_DICT[output_type]) float32 — matches
    MultiSimpleDecoder.forward (no bias in any branch, since Linear(bias=False)
    and the wiki/kb branches pass the None bias).
    """
    if output_type not in ANSWER_NUM_DICT:
        raise ValueError('Decoder error: output type not one of the valid')
    num_out = ANSWER_NUM_DICT[output_type]

    B, D = inputs.shape
    w_t = jnp.transpose(weight[:num_out, :])          # (D, num_out)

    # Row tile: many rows per grid step; keep it a multiple of 8 sublanes.
    tm = tile_m if B >= tile_m else _round_up(B, 8)
    m_pad = _round_up(B, tm)
    # Column tile: lane-dense (multiple of 128), MXU-friendly 256.
    n_pad = _round_up(num_out, tile_n)

    # bf16 streamed operands (f32 accumulate inside the kernel). Zero padding
    # keeps padded rows/cols exactly zero; they are sliced off below.
    x = jnp.zeros((m_pad, D), jnp.bfloat16).at[:B, :].set(
        inputs.astype(jnp.bfloat16))
    w = jnp.zeros((D, n_pad), jnp.bfloat16).at[:, :num_out].set(
        w_t.astype(jnp.bfloat16))

    grid = (m_pad // tm, n_pad // tile_n)
    out = pl.pallas_call(
        linear_kernel,
        out_shape=jax.ShapeDtypeStruct((m_pad, n_pad), jnp.float32),
        grid_spec=pltpu.PrefetchScalarGridSpec(
            num_scalar_prefetch=0,
            grid=grid,
            in_specs=[
                pl.BlockSpec((tm, D), lambda i, j: (i, 0)),      # row tile of x
                pl.BlockSpec((D, tile_n), lambda i, j: (0, j)),  # col tile of W^T
            ],
            out_specs=pl.BlockSpec((tm, tile_n), lambda i, j: (i, j)),
        ),
        compiler_params=pltpu.CompilerParams(
            dimension_semantics=("parallel", "parallel")),
    )(x, w)
    return out[:B, :num_out]


def multi_simple_decoder_reference(inputs, weight, output_type):
    """Pure-JAX f32 reference mirroring the PyTorch forward."""
    if output_type not in ANSWER_NUM_DICT:
        raise ValueError('Decoder error: output type not one of the valid')
    num_out = ANSWER_NUM_DICT[output_type]
    return inputs.astype(jnp.float32) @ weight[:num_out, :].astype(jnp.float32).T


if __name__ == "__main__":
    key = jax.random.PRNGKey(0)
    k_x, k_w = jax.random.split(key, 2)

    B, D = 2, 32                      # small shapes: batch=2, output_dim(hidden)=32
    inputs = jax.random.normal(k_x, (B, D), dtype=jnp.float32)

    # nn.Linear(output_dim, ANSWER_NUM_DICT['open'], bias=False) weight init
    bound = 1.0 / jnp.sqrt(jnp.float32(D))
    weight = jax.random.uniform(k_w, (ANSWER_NUM_DICT['open'], D),
                                jnp.float32, -bound, bound)

    for output_type in ('open', 'wiki', 'kb'):
        out = multi_simple_decoder_forward(inputs, weight, output_type)
        out = jax.block_until_ready(out)
        ref = multi_simple_decoder_reference(inputs, weight, output_type)
        assert out.shape == (B, ANSWER_NUM_DICT[output_type]), output_type
        # bf16 streamed operands -> relax tolerance vs f32 reference.
        assert jnp.allclose(out, ref, atol=2e-2, rtol=2e-2), \
            f"mismatch vs reference for output_type={output_type}"

    print("KERNEL_OK")
</pallas_src>

<mosaic_0001>
module attributes {stable_mosaic.version = 11 : i64} {
  func.func @linear_kernel(%arg0: i32, %arg1: i32, %arg2: memref<8x32xbf16, #tpu.memory_space<vmem>>, %arg3: memref<32x256xbf16, #tpu.memory_space<vmem>>, %arg4: memref<8x256xf32, #tpu.memory_space<vmem>>) attributes {dimension_semantics = [#tpu.dimension_semantics<parallel>, #tpu.dimension_semantics<parallel>], iteration_bounds = array<i64: 1, 41>, scalar_prefetch = 0 : i64, scratch_operands = 0 : i64, tpu.core_type = #tpu.core_type<tc>, window_params = [{transform_indices = @transform_0, window_bounds = array<i64: 8, 32>}, {transform_indices = @transform_1, window_bounds = array<i64: 32, 256>}, {transform_indices = @transform_2, window_bounds = array<i64: 8, 256>}]} {
    %c0 = arith.constant 0 : index
    %c0_0 = arith.constant 0 : index
    %0 = vector.load %arg2[%c0, %c0_0] : memref<8x32xbf16, #tpu.memory_space<vmem>>, vector<8x32xbf16>
    %c0_1 = arith.constant 0 : index
    %c0_2 = arith.constant 0 : index
    %1 = vector.load %arg3[%c0_1, %c0_2] : memref<32x256xbf16, #tpu.memory_space<vmem>>, vector<32x256xbf16>
    %cst = arith.constant dense<0.000000e+00> : vector<8x256xf32>
    %2 = tpu.matmul %0, %1, %cst {dimension_numbers = #tpu.dot_dimension_numbers<[1], [0], [0], [1], [0, 0, 1, 1], [], []>} : vector<8x32xbf16>, vector<32x256xbf16>, vector<8x256xf32> -> vector<8x256xf32>
    %c0_3 = arith.constant 0 : index
    %c0_4 = arith.constant 0 : index
    %3 = vector.load %arg4[%c0_3, %c0_4] : memref<8x256xf32, #tpu.memory_space<vmem>>, vector<8x256xf32>
    tpu.vector_store %arg4[%c0_3, %c0_4], %2 {strides = array<i32>} : memref<8x256xf32, #tpu.memory_space<vmem>>, vector<8x256xf32>,
    return
  }
  func.func @transform_0(%arg0: i32, %arg1: i32) -> (i32, i32) {
    %c0_i32 = arith.constant 0 : i32
    %c0_i32_0 = arith.constant 0 : i32
    return %arg0, %c0_i32 : i32, i32
  }
  func.func @transform_1(%arg0: i32, %arg1: i32) -> (i32, i32) {
    %c0_i32 = arith.constant 0 : i32
    %c0_i32_0 = arith.constant 0 : i32
    return %c0_i32, %arg1 : i32, i32
  }
  func.func @transform_2(%arg0: i32, %arg1: i32) -> (i32, i32) {
    %c0_i32 = arith.constant 0 : i32
    return %arg0, %arg1 : i32, i32
  }
}

</mosaic_0001>

<bundles_post_ra>
// kernel: tpu_custom_call.1
= control target key start
LH: loop header
LB: loop body
LE: loop exit
PB: predicated region body
PF: predicated region fallthrough
CT: control target
= control target key end

     0   :  { %7 = vsyncpa [#allocation3], 0  ;;  %s826_s0 = inlined_call_operand.hbm [shape: bf16[8,32], index: 0, kind: input, shape index: {}]   ;;  %s827_s1 = inlined_call_operand.hbm [shape: bf16[32,10496], index: 1, kind: input, shape index: {}]   ;;  %s828_s2 = inlined_call_operand.hbm [shape: f32[8,10496], index: 2, kind: output, shape index: {}]  }
   0x1   :  { %8 = vsyncpa [#allocation6], 0 }
   0x2   :  { %10 = vsyncpa [#allocation6 + $0x1], 0 }
   0x3   :  { %11 = vsyncpa [#allocation4], 0 }
   0x4   :  { %13 = vsyncpa [#allocation4 + $0x1], 0  ;;  %s652_s9 = smov 0   ;;  %s654_s10 = smov 0  }
   0x5   :  { %s656_s11 = smov 0   ;;  %s658_s12 = smov 0  }
   0x6   :  { %s660_s13 = smov 0   ;;  %s662_s14 = smov 0  }
   0x7 LB: > { %s383_s15 = sadd.s32 4294967295, %s628_s14   ;;  %s384_s16 = sadd.s32 4294967294, %s628_s14   ;;  %s628_s14 = sphi %s662_s14, %s19_s14   ;;  %s624_s13 = sphi %s660_s13, %s846_s13   ;;  %s620_s12 = sphi %s658_s12, %s845_s12   ;;  %s616_s11 = sphi %s656_s11, %s844_s11   ;;  %s612_s10 = sphi %s654_s10, %s843_s10   ;;  %s608_s9 = sphi %s652_s9, %s842_s9  }
   0x8   : > { %s64_s17 = sadd.s32 1, %s616_s11  ;;  %p71_p0 = scmp.ne.s32.totalorder %s616_s11, %s612_s10 }
   0x9   : > { %p72_p1 = scmp.eq.s32.totalorder %s628_s14, 0  ;;  %p77_p2 = scmp.ne.s32.totalorder %s612_s10, %s608_s9 }
   0xa   : > { %p690_p3 = scmp.eq.s32.totalorder %s383_s15, 0  ;;  %p103_p4 = scmp.eq.s32.totalorder %s383_s15, 40 }
   0xb   : > { %p694_p5 = por %p72_p1, %p71_p0  ;;  %p109_p6 = scmp.eq.s32.totalorder %s384_s16, 40 }
   0xc   : > { %p700_p7 = por %p690_p3, %p77_p2  ;;  %p704_p8 = por %p103_p4, %p71_p0 }
   0xd   : > { %p708_p9 = por %p109_p6, %p77_p2  ;;  %p385_p10 = scmp.ge.s32.totalorder %s628_s14, 1 }
   0xe   : > { %s833_s20 = scalar_select %p700_p7, 1, 0 }
   0xf   : > { %s834_s21 = scalar_select %p704_p8, 1, 0 }
  0x10   : > { %s835_s22 = scalar_select %p708_p9, 1, 0 }
  0x11   : > { %p116_p11 = scmp.lt.s32.totalorder %s628_s14, 42  ;;  %s630_s24 = smov [#allocation2]  }
  0x12   : > { %s131_s25 = sshll.u32 %s630_s24, 4  ;;  %p428_p13 = scmp.lt.s32.totalorder %s628_s14, 41  ;;  %s132_s25 = int_to_ptr.vmem [resolvable:$true] %s131_s25 }
  0x13   : > { %p714_p12 = pnand %p385_p10, %p116_p11  ;;  %s28_s28 = sadd.s32 1, %s624_s13 }
  0x14   : > { %p723_p1 = pnand %p428_p13, %p694_p5  ;;  %p29_p4 = scmp.ge.s32.totalorder %s28_s28, 41 }
  0x15   : > { %p415_p0 = pneg %p714_p12  ;;  %s142_s29 = sand.u32 1, %s616_s11  }
  0x16   : > { %s501_s30 = scalar_lea.vmem %s132_s25, 64  ;;  %p509_p8 = scmp.lt.s32.totalorder %s132_s25, %s132_s25 }
  0x17   : > { %p729_p2 = pnand %p415_p0, %p690_p3  ;;  %p502_p10 = scmp.ne.s32.totalorder %s132_s25, %s501_s30 }
  0x18   : > { %p510_p5 = scmp.lt.s32.totalorder %s501_s30, %s501_s30 }
  0x19   : > { %p492_p6 = pneg %p729_p2 }
  0x1a   : > { %p511_p13 = por %p510_p5, %p509_p8 }
  0x1b   : > { %p504_p11 = pnand %p502_p10, %p492_p6 }
  0x1d   : > { %p505_p9 = pneg %p504_p11 }
  0x1f   : > { %p512_p7 = pnand %p511_p13, %p505_p9 }
  0x21   : > { %515 = shalt.err (!%p512_p7)
}
  0x22   : > { %418 = dma.hbm_to_vmem [thread:$0]  (!%p729_p2), %s826_s0, 64, %s132_s25, [#allocation3]  }
  0x23   : > { %s848_s28 = smov (%p29_p4, %s28_s28), 0  ;;  %s388_s5 = sshll.u32 %s142_s29, 5 }
  0x24   : > { %s61_s6 = ssub.s32 %s624_s13, %s848_s28  ;;  %s405_s7 = sshll.u32 %s624_s13, 7 }
  0x25   : > { %p62_p0 = scmp.eq.s32.totalorder %s61_s6, 0  ;;  %s152_s16 = scalar_lea.hbm %s827_s1, %s405_s7 }
  0x26   : > { %s146_s19 = scalar_lea.vmem [#allocation5], %s388_s5  ;;  %s143_s30 = scalar_lea.sflag [#allocation6], %s142_s29 }
  0x27   : > { %s153_s24 = sshll.u32 %s146_s19, 4  ;;  %p518_p7 = pneg %p723_p1  ;;  %s154_s24 = int_to_ptr.vmem [resolvable:$true] %s153_s24 }
  0x28   : > { %s753_s27 = scalar_select %p62_p0, %s616_s11, %s64_s17  }
  0x29   : > { %s529_s25 = scalar_lea.vmem %s154_s24, 512  ;;  %s631_s3 = smov [#allocation5]  }
  0x2a   : > { %p530_p8 = scmp.ne.s32.totalorder %s154_s24, %s529_s25  ;;  %s534_s4 = sshll.u32 %s631_s3, 4  ;;  %s535_s4 = int_to_ptr.vmem [resolvable:$false] %s534_s4 }
  0x2b   : > { %s536_s6 = scalar_lea.vmem %s535_s4, 1024  ;;  %p537_p4 = scmp.lt.s32.totalorder %s154_s24, %s535_s4 }
  0x2c   : > { %p532_p9 = pnand %p530_p8, %p518_p7  ;;  %p538_p6 = scmp.lt.s32.totalorder %s536_s6, %s529_s25 }
  0x2e   : > { %p533_p2 = pneg %p532_p9  ;;  %p539_p10 = por %p538_p6, %p537_p4 }
  0x30   : > { %p540_p11 = pnand %p539_p10, %p533_p2 }
  0x32   : > { %543 = shalt.err (!%p540_p11)
}
  0x33   : > { %s632_s5 = smov 5248   ;;  %s633_s17 = smov 128  }
  0x34   : > { %s634_s7 = smov 8   ;;  %165 = sbr.rel (%p714_p12) target bundleno = 280 (0x118), region = 28 }
  0x35   : > { %422 = dma.hbm_to_vmem [thread:$0]  (!%p723_p1), %s152_s16, 512, %s154_s24, %s143_s30, %s632_s5, %s633_s17, %s634_s7  }
  0x39   : > { %595 = dma.done.wait (%p690_p3), [#allocation3], 64  }
  0x3a   : > { %597 = vsyncadd (%p690_p3), [#allocation3], 4294967232  ;;  %s766_s29 = sand.u32 1, %s612_s10   ;;  %p839_p5 = scmp.ne.s32.totalorder %s833_s20, 0 }
  0x3b   : > { %s393_s8 = sshll.u32 %s766_s29, 5  ;;  %s172_s15 = scalar_lea.sflag [#allocation6], %s766_s29 }
  0x3c   : > { %s175_s19 = scalar_lea.vmem [#allocation5], %s393_s8 }
  0x3d   : > { %599 = dma.done.wait (%p839_p5), %s172_s15, 512  }
  0x3e   : > { %601 = vsyncadd (%p839_p5), %s172_s15, 4294966784  ;;  %v635_v0 = vmov 0   ;;  %v484_v1 = vld [vmem:[%s175_s19 + $0x14] ss:$8 sps:$4 sm:$0xff]   ;;  %v486_v2 = vld [vmem:[%s175_s19 + $0x10] ss:$8 sps:$4 sm:$0xff]  }
  0x3f   : > { %260 = vmatprep.mubr.bf16.mxu0 %v635_v0  ;;  %240 = vmatprep.subr.bf16.mxu0 %v484_v1  ;;  %v487_v3 = vld [vmem:[%s175_s19 + $0x4] ss:$8 sps:$4 sm:$0xff]   ;;  %v489_v4 = vld [vmem:[%s175_s19] ss:$8 sps:$4 sm:$0xff]   ;;  %v199_v5 = vld [vmem:[#allocation2] sm:$0xf] }
  0x40   : > { %241 = vmatpush1.bf16.msra.mxu0 %v486_v2  ;;  %vm224_vm0 = vcmask 261120   ;;  %s394_s18 = sshll.u32 %s766_s29, 4  ;;  %s406_s26 = sshll.u32 %s620_s12, 8 }
  0x41   : > { %242 = vmatprep.subr.bf16.mxu0 %v487_v3  ;;  %s195_s20 = scalar_lea.vmem [#allocation7], %s394_s18  ;;  %s781_s30 = scalar_lea.hbm %s828_s2, %s406_s26 }
  0x42   : > { %s288_s23 = sshll.u32 %s195_s20, 4  ;;  %s272_s25 = scalar_lea.sflag [#allocation4], %s766_s29  ;;  %s776_s23 = int_to_ptr.vmem [resolvable:$true] %s288_s23 }
  0x43   : > { %s544_s3 = scalar_lea.vmem %s776_s23, 256  ;;  %p840_p12 = scmp.ne.s32.totalorder %s834_s21, 0 }
  0x44   : > { %243 = vmatpush1.bf16.msra.mxu0 %v489_v4  ;;  %p545_p3 = scmp.ne.s32.totalorder %s776_s23, %s544_s3  ;;  %s636_s12 = smov [#allocation7]  }
  0x45   : > { %s548_s4 = sshll.u32 %s636_s12, 4  ;;  %s549_s4 = int_to_ptr.vmem [resolvable:$false] %s548_s4 }
  0x46   : > { %p546_p1 = pnand %p545_p3, %p840_p12  ;;  %s550_s6 = scalar_lea.vmem %s549_s4, 512 }
  0x47   : > { %399 = vmatmul.mubr.msk.bf16.vlgmr.msra.gmra.mxu0 %vm224_vm0, %v199_v5  ;;  %p551_p0 = scmp.lt.s32.totalorder %s776_s23, %s549_s4  ;;  %p552_p7 = scmp.lt.s32.totalorder %s550_s6, %s544_s3 }
  0x48   : > { %p547_p13 = pneg %p546_p1 }
  0x49   : > { %p553_p8 = por %p552_p7, %p551_p0 }
  0x4b   : > { %p554_p9 = pnand %p553_p8, %p547_p13 }
 0x107   : > { %v262_v6 = vpop.f32.mrf.mxu0 }
 0x108   : > { %269 = vst [vmem:[%s195_s20] sm:$0xff] %v262_v6 }
 0x109   : > { %v264_v7 = vpop.f32.mrf.mxu0 }
 0x10a   : > { %270 = vst [vmem:[%s195_s20 + $0x8] sm:$0xff] %v264_v7 }
 0x10b   : > { %v266_v8 = vpop.f32.mrf.mxu0 }
 0x10c   : > { %557 = shalt.err (!%p554_p9)
}
 0x10d   : > { %s558_s5 = scalar_lea.hbm %s781_s30, 256  ;;  %s562_s29 = scalar_lea.hbm %s828_s2, 10496 }
 0x10e   : > { %p559_p2 = scmp.ne.s32.totalorder %s781_s30, %s558_s5  ;;  %p563_p10 = scmp.lt.s32.totalorder %s781_s30, %s828_s2 }
 0x10f   : > { %p564_p11 = scmp.lt.s32.totalorder %s562_s29, %s558_s5 }
 0x110   : > { %p560_p4 = pnand %p559_p2, %p840_p12 }
 0x111   : > { %p565_p5 = por %p564_p11, %p563_p10 }
 0x112   : > { %p561_p6 = pneg %p560_p4 }
 0x114   : > { %p566_p3 = pnand %p565_p5, %p561_p6 }
 0x116   : > { %569 = shalt.err (!%p566_p3)
}
 0x117   : > { %413 = dma.vmem_to_hbm [thread:$0]  (%p840_p12), %s776_s23, 256, %s781_s30, %s272_s25   ;;  %v267_v9 = vpop.f32.mrf.mxu0 }
 0x118 PF: > { %p430_p1 = scmp.ge.s32.totalorder %s628_s14, 2  ;;  %s300_s19 = sand.u32 1, %s608_s9  }
 0x119   : > { %p841_p13 = scmp.ne.s32.totalorder %s835_s22, 0  ;;  %s301_s18 = scalar_lea.sflag [#allocation4], %s300_s19 }
 0x11b   : > { %p424_p0 = pnand %p430_p1, %p841_p13 }
 0x11d   : > { %p425_p7 = pneg %p424_p0 }
 0x11f   : > { %603 = dma.done.wait (%p425_p7), %s301_s18, 256  }
 0x120   : > { %605 = vsyncadd (%p425_p7), %s301_s18, 4294967040  ;;  %s19_s14 = sadd.s32 1, %s628_s14   ;;  %s842_s9 = smov %s612_s10 }
 0x121   : > { %p16_p8 = scmp.ge.s32.totalorder %s19_s14, 43   ;;  %s843_s10 = smov %s616_s11 }
 0x122   : > { %s844_s11 = smov %s753_s27  ;;  %s845_s12 = smov %s624_s13 }
 0x123   : > { %s846_s13 = smov %s848_s28  ;;  %18 = sbr.rel (!%p16_p8) target bundleno = 7 (0x7), region = 79 }
 0x128   :  { %306 = vsyncpa [#allocation3], 1 }
 0x129   :  { %308 = vsyncpa [#allocation3 + $0x1], 1 }
 0x12a   :  { %309 = vsyncpa [#allocation6], 1 }
 0x12b   :  { %311 = vsyncpa [#allocation6 + $0x1], 1 }
 0x12c   :  { %312 = vsyncpa [#allocation4], 1 }
 0x12d   :  { %314 = vsyncpa [#allocation4 + $0x1], 1 }

</bundles_post_ra>
